<compile_context>
chip_gen: v7x
topology: tpu7x:2x2x1
jax: 0.10.0
libtpu: 0.0.40
codegen_flags: <defaults>
</compile_context>

<pallas_src>
import functools

import jax
import jax.numpy as jnp
from jax.experimental import pallas as pl
from jax.experimental.pallas import tpu as pltpu

DROPOUT = 0.2


def _round_up(n, m):
    return (n + m - 1) // m * m


def _vmem_capacity_bytes():
    """Physical VMEM per core; conservative 64 MiB (v7x) fallback."""
    try:
        return int(pltpu.get_tpu_info().vmem_capacity_bytes)
    except Exception:
        return 64 * 1024 * 1024


def _tk_candidates(H):
    """tk candidates: full H first (weights resident), then divisors of H that
    are multiples of 256 (descending), then remaining multiples of 128."""
    cands = [H]
    if H % 128 == 0:
        m256 = sorted((t for t in range(256, H, 256) if H % t == 0), reverse=True)
        m128 = sorted((t for t in range(128, H, 128)
                       if H % t == 0 and t % 256 != 0), reverse=True)
        cands += m256 + m128
    return cands


def _estimate_vmem(tm, tk, E, act_bytes, w_bytes, out_bytes, training):
    est = (2 * tm * E * act_bytes          # x tiles (double buffered)
           + 2 * E * tk * w_bytes          # W1 column-block tiles
           + 2 * tk * 4                    # b1 tiles (f32)
           + 2 * tk * E * w_bytes          # W2 row-block tiles
           + 2 * E * 4                     # b2 tiles (f32)
           + 2 * tm * E * out_bytes        # output tiles
           + tm * E * 4)                   # f32 accumulator scratch
    if training:
        est += 2 * tm * E * 4              # dropout-uniform tiles (f32)
    return est


# ----------------------------- kernels --------------------------------------


def _ffn_accumulate(x_ref, w1_ref, b1_ref, w2_ref, b2_ref, acc_ref):
    """One H-block of relu(x @ W1 + b1) @ W2, accumulated into acc_ref (f32)."""
    k = pl.program_id(1)

    @pl.when(k == 0)
    def _init():
        # b2 is added exactly once, at accumulator init.
        acc_ref[...] = jnp.broadcast_to(
            b2_ref[...].astype(jnp.float32), acc_ref.shape)

    # h_k = relu(x @ W1[:, k-block] + b1[k-block])            (tm, tk)
    h = jnp.dot(x_ref[...], w1_ref[...], preferred_element_type=jnp.float32)
    h = jnp.maximum(h + b1_ref[...].astype(jnp.float32), 0.0)
    # acc += h_k @ W2[k-block, :]                             (tm, E)
    acc_ref[...] += jnp.dot(h.astype(w2_ref.dtype), w2_ref[...],
                            preferred_element_type=jnp.float32)
    return k


def _ffn_eval_kernel(x_ref, w1_ref, b1_ref, w2_ref, b2_ref, o_ref, acc_ref):
    k = _ffn_accumulate(x_ref, w1_ref, b1_ref, w2_ref, b2_ref, acc_ref)

    @pl.when(k == pl.num_programs(1) - 1)
    def _finalize():
        o_ref[...] = acc_ref[...].astype(o_ref.dtype)   # eval: dropout == identity


def _ffn_train_kernel(x_ref, w1_ref, b1_ref, w2_ref, b2_ref, rand_ref,
                      o_ref, acc_ref, *, p, inv_keep):
    k = _ffn_accumulate(x_ref, w1_ref, b1_ref, w2_ref, b2_ref, acc_ref)

    @pl.when(k == pl.num_programs(1) - 1)
    def _finalize():
        keep = rand_ref[...] >= p                        # keep with prob 1 - p
        y = acc_ref[...] * inv_keep                      # inverted dropout scale
        o_ref[...] = jnp.where(keep, y, 0.0).astype(o_ref.dtype)


# ----------------------------- wrapper ---------------------------------------


def feed_forward(x, w1, b1, w2, b2, *, training=False, rng_key=None, seed=0,
                 block_rows=512, block_h=None, compute_dtype=jnp.bfloat16,
                 single_buffer_resident_weights=False):
    """x: (..., E).  w1: (E, 4E), b1: (4E,), w2: (4E, E), b2: (E,)."""
    orig_shape = x.shape
    orig_dtype = x.dtype
    E = orig_shape[-1]
    H = w1.shape[1]

    x2 = x.reshape(-1, E)
    N = x2.shape[0]

    # Cast matmul operands to the compute dtype (bf16 by default for MXU peak
    # with f32 accumulation).  Weight casts only happen if needed -- store the
    # weights in bf16 ahead of time to avoid the extra HBM pass per call.
    if x2.dtype != compute_dtype:
        x2 = x2.astype(compute_dtype)
    if w1.dtype != compute_dtype:
        w1 = w1.astype(compute_dtype)
    if w2.dtype != compute_dtype:
        w2 = w2.astype(compute_dtype)
    b1_2d = b1.reshape(1, H).astype(jnp.float32)
    b2_2d = b2.reshape(1, E).astype(jnp.float32)

    act_bytes = jnp.dtype(compute_dtype).itemsize
    w_bytes = jnp.dtype(w1.dtype).itemsize
    out_bytes = jnp.dtype(orig_dtype).itemsize

    cap = _vmem_capacity_bytes()
    budget = max(cap - 16 * (1 << 20), 24 * (1 << 20))   # headroom for Mosaic

    # Row tile: multiple of 128, big enough to be compute-bound vs weight
    # re-streaming; ensure at least 2 row tiles when N > 128 so both v7x
    # TensorCores get work on the "parallel" row axis.
    tm = max(128, min(_round_up(block_rows, 128), _round_up(N, 128)))
    if _round_up(N, tm) // tm == 1 and tm > 128:
        tm = max(128, min(tm, _round_up((N + 1) // 2, 128)))

    # Hidden tile: prefer weights fully resident (tk == H); otherwise the
    # largest divisor of H (preferring multiples of 256) that fits the budget.
    cands = _tk_candidates(H)
    if block_h is not None:
        allowed = [t for t in cands if t <= block_h]
        tk = allowed[0] if allowed else cands[-1]
    else:
        tk = next((t for t in cands
                   if _estimate_vmem(tm, t, E, act_bytes, w_bytes, out_bytes,
                                     training) <= budget),
                  cands[-1])
    # If even the smallest tk is over budget, shrink the row tile (tk first,
    # then tm -- per v7x guidance).
    while tm > 128 and _estimate_vmem(tm, tk, E, act_bytes, w_bytes, out_bytes,
                                      training) > budget:
        tm = max(128, _round_up(tm // 2, 128))

    N_pad = _round_up(N, tm)
    if N_pad != N:
        x2 = jnp.pad(x2, ((0, N_pad - N), (0, 0)))
    num_i = N_pad // tm
    num_k = H // tk

    est = _estimate_vmem(tm, tk, E, act_bytes, w_bytes, out_bytes, training)
    vmem_limit = int(min(cap - 12 * (1 << 20),
                         max(int(1.3 * est) + (4 << 20), 32 << 20)))

    weights_const = (num_k == 1)

    def wspec(shape, imap, constant):
        # Grid-constant blocks are never re-DMA'd; opt-in single buffering
        # halves their resident footprint on jax versions that support it.
        if single_buffer_resident_weights and constant and hasattr(pl, "Buffered"):
            return pl.BlockSpec(shape, imap, pipeline_mode=pl.Buffered(1))
        return pl.BlockSpec(shape, imap)

    xm = lambda i, k: (i, 0)
    in_specs = [
        pl.BlockSpec((tm, E), xm),                    # x row tile
        wspec((E, tk), lambda i, k: (0, k), weights_const),   # W1 column block
        wspec((1, tk), lambda i, k: (0, k), weights_const),   # b1 block
        wspec((tk, E), lambda i, k: (k, 0), weights_const),   # W2 row block
        wspec((1, E), lambda i, k: (0, 0), True),             # b2 (grid-constant)
    ]
    if training:
        in_specs.append(pl.BlockSpec((tm, E), xm))    # dropout uniforms
    out_spec = pl.BlockSpec((tm, E), xm)

    grid = (num_i, num_k)
    cparams = pltpu.CompilerParams(
        dimension_semantics=("parallel", "arbitrary"),   # rows across TCs
        vmem_limit_bytes=vmem_limit)
    out_shape = jax.ShapeDtypeStruct((N_pad, E), orig_dtype)
    scratch = [pltpu.VMEM((tm, E), jnp.float32)]

    if not training:
        y = pl.pallas_call(
            _ffn_eval_kernel,
            out_shape=out_shape,
            grid_spec=pltpu.PrefetchScalarGridSpec(
                num_scalar_prefetch=0, grid=grid,
                in_specs=in_specs, out_specs=out_spec,
                scratch_shapes=scratch),
            compiler_params=cparams,
        )(x2, w1, b1_2d, w2, b2_2d)
    else:
        key = rng_key if rng_key is not None else jax.random.PRNGKey(seed)
        rand = jax.random.uniform(key, (N_pad, E), dtype=jnp.float32)
        y = pl.pallas_call(
            functools.partial(_ffn_train_kernel, p=DROPOUT,
                              inv_keep=1.0 / (1.0 - DROPOUT)),
            out_shape=out_shape,
            grid_spec=pltpu.PrefetchScalarGridSpec(
                num_scalar_prefetch=0, grid=grid,
                in_specs=in_specs, out_specs=out_spec,
                scratch_shapes=scratch),
            compiler_params=cparams,
        )(x2, w1, b1_2d, w2, b2_2d, rand)

    if N_pad != N:
        y = y[:N]
    return y.reshape(orig_shape)


# ----------------------------- helpers / test --------------------------------


def init_params(key, embedding_size):
    """Deterministic init mimicking nn.Linear defaults (uniform +/- 1/sqrt(fan_in))."""
    E = embedding_size
    H = 4 * E
    k1, k2, k3, k4 = jax.random.split(key, 4)
    bound1 = 1.0 / (E ** 0.5)
    bound2 = 1.0 / (H ** 0.5)
    w1 = jax.random.uniform(k1, (E, H), jnp.float32, -bound1, bound1)
    b1 = jax.random.uniform(k2, (H,), jnp.float32, -bound1, bound1)
    w2 = jax.random.uniform(k3, (H, E), jnp.float32, -bound2, bound2)
    b2 = jax.random.uniform(k4, (E,), jnp.float32, -bound2, bound2)
    return w1, b1, w2, b2


def _reference(x, w1, b1, w2, b2):
    h = jnp.maximum(x @ w1 + b1, 0.0)
    return h @ w2 + b2


if __name__ == "__main__":
    # Small but lane-dense shapes: E=128, H=512, N=256 rows.
    B, T, E = 4, 64, 128
    key = jax.random.PRNGKey(0)
    kx, kp, kd = jax.random.split(key, 3)
    x = jax.random.normal(kx, (B, T, E), dtype=jnp.float32)
    w1, b1, w2, b2 = init_params(kp, E)
    ref = _reference(x.reshape(-1, E), w1, b1, w2, b2).reshape(B, T, E)

    # 1) f32 compute with the hidden dim streamed in two 256-wide blocks
    #    (exercises the accumulator / init / finalize path), tight tolerance.
    out_f32 = feed_forward(x, w1, b1, w2, b2, training=False,
                           compute_dtype=jnp.float32, block_h=256)
    out_f32 = jax.block_until_ready(out_f32)
    assert out_f32.shape == x.shape and out_f32.dtype == x.dtype
    assert jnp.allclose(out_f32, ref, atol=1e-4, rtol=1e-4), "f32 path mismatch"

    # 2) Default path: bf16 MXU inputs (weights pre-cast once), f32 accumulation,
    #    weights fully resident (tk == H).  Looser tolerance vs f32 reference.
    w1_bf, w2_bf = w1.astype(jnp.bfloat16), w2.astype(jnp.bfloat16)
    out_bf = feed_forward(x, w1_bf, b1, w2_bf, b2, training=False)
    out_bf = jax.block_until_ready(out_bf)
    assert out_bf.shape == x.shape and out_bf.dtype == x.dtype
    assert jnp.allclose(out_bf, ref, atol=5e-2, rtol=5e-2), "bf16 path mismatch"

    # 3) Training path: inverted dropout (p=0.2) fused into the finalize step.
    #    # TODO(synk): the dropout mask stream is not bit-identical to
    #    # torch.nn.Dropout's PRNG (only distributionally equivalent).
    out_tr = feed_forward(x, w1_bf, b1, w2_bf, b2, training=True, rng_key=kd)
    out_tr = jax.block_until_ready(out_tr)
    assert out_tr.shape == x.shape and out_tr.dtype == x.dtype
    assert bool(jnp.all(jnp.isfinite(out_tr)))
    drop_frac = float(jnp.mean((out_tr == 0.0).astype(jnp.float32)))
    assert 0.14 < drop_frac < 0.26, f"unexpected dropout fraction {drop_frac}"
    kept = out_tr != 0.0
    scaled = ref / (1.0 - DROPOUT)
    assert jnp.allclose(jnp.where(kept, out_tr, 0.0),
                        jnp.where(kept, scaled, 0.0),
                        atol=7e-2, rtol=7e-2), "kept values not scaled by 1/(1-p)"

    print("KERNEL_OK")
</pallas_src>

<mosaic_0001>
module attributes {stable_mosaic.version = 11 : i64} {
  func.func @_ffn_eval_kernel(%arg0: i32, %arg1: i32, %arg2: memref<128x128xf32, #tpu.memory_space<vmem>>, %arg3: memref<128x256xf32, #tpu.memory_space<vmem>>, %arg4: memref<1x256xf32, #tpu.memory_space<vmem>>, %arg5: memref<256x128xf32, #tpu.memory_space<vmem>>, %arg6: memref<1x128xf32, #tpu.memory_space<vmem>>, %arg7: memref<128x128xf32, #tpu.memory_space<vmem>>, %arg8: memref<128x128xf32, #tpu.memory_space<vmem>>) attributes {dimension_semantics = [#tpu.dimension_semantics<parallel>, #tpu.dimension_semantics<arbitrary>], iteration_bounds = array<i64: 2, 2>, scalar_prefetch = 0 : i64, scratch_operands = 1 : i64, tpu.core_type = #tpu.core_type<tc>, window_params = [{transform_indices = @transform_0, window_bounds = array<i64: 128, 128>}, {transform_indices = @transform_1, window_bounds = array<i64: 128, 256>}, {transform_indices = @transform_2, window_bounds = array<i64: 1, 256>}, {transform_indices = @transform_3, window_bounds = array<i64: 256, 128>}, {pipeline_mode = #tpu.pipeline_mode<synchronous>, transform_indices = @transform_4, window_bounds = array<i64: 1, 128>}, {transform_indices = @transform_5, window_bounds = array<i64: 128, 128>}]} {
    %c0_i32 = arith.constant 0 : i32
    %0 = arith.cmpi eq, %arg1, %c0_i32 : i32
    %1 = arith.extui %0 : i1 to i32
    %c0_i32_0 = arith.constant 0 : i32
    %2 = arith.cmpi ne, %1, %c0_i32_0 : i32
    scf.if %2 {
      %c0_15 = arith.constant 0 : index
      %c0_16 = arith.constant 0 : index
      %19 = vector.load %arg6[%c0_15, %c0_16] : memref<1x128xf32, #tpu.memory_space<vmem>>, vector<1x128xf32>
      %20 = vector.shape_cast %19 : vector<1x128xf32> to vector<1x128xf32>
      %21 = vector.broadcast %20 : vector<1x128xf32> to vector<128x128xf32>
      %c0_17 = arith.constant 0 : index
      %c0_18 = arith.constant 0 : index
      %22 = vector.load %arg8[%c0_17, %c0_18] : memref<128x128xf32, #tpu.memory_space<vmem>>, vector<128x128xf32>
      tpu.vector_store %arg8[%c0_17, %c0_18], %21 {strides = array<i32>} : memref<128x128xf32, #tpu.memory_space<vmem>>, vector<128x128xf32>,
    } else {
    }
    %c0 = arith.constant 0 : index
    %c0_1 = arith.constant 0 : index
    %3 = vector.load %arg2[%c0, %c0_1] : memref<128x128xf32, #tpu.memory_space<vmem>>, vector<128x128xf32>
    %c0_2 = arith.constant 0 : index
    %c0_3 = arith.constant 0 : index
    %4 = vector.load %arg3[%c0_2, %c0_3] : memref<128x256xf32, #tpu.memory_space<vmem>>, vector<128x256xf32>
    %cst = arith.constant dense<0.000000e+00> : vector<128x256xf32>
    %5 = tpu.matmul %3, %4, %cst {dimension_numbers = #tpu.dot_dimension_numbers<[1], [0], [0], [1], [0, 0, 1, 1], [], []>} : vector<128x128xf32>, vector<128x256xf32>, vector<128x256xf32> -> vector<128x256xf32>
    %c0_4 = arith.constant 0 : index
    %c0_5 = arith.constant 0 : index
    %6 = vector.load %arg4[%c0_4, %c0_5] : memref<1x256xf32, #tpu.memory_space<vmem>>, vector<1x256xf32>
    %7 = vector.broadcast %6 : vector<1x256xf32> to vector<128x256xf32>
    %8 = arith.addf %5, %7 : vector<128x256xf32>
    %cst_6 = arith.constant 0.000000e+00 : f32
    %9 = vector.broadcast %cst_6 : f32 to vector<128x256xf32>
    %10 = arith.maximumf %8, %9 : vector<128x256xf32>
    %c0_7 = arith.constant 0 : index
    %c0_8 = arith.constant 0 : index
    %11 = vector.load %arg8[%c0_7, %c0_8] : memref<128x128xf32, #tpu.memory_space<vmem>>, vector<128x128xf32>
    %c0_9 = arith.constant 0 : index
    %c0_10 = arith.constant 0 : index
    %12 = vector.load %arg5[%c0_9, %c0_10] : memref<256x128xf32, #tpu.memory_space<vmem>>, vector<256x128xf32>
    %cst_11 = arith.constant dense<0.000000e+00> : vector<128x128xf32>
    %13 = tpu.matmul %10, %12, %cst_11 {dimension_numbers = #tpu.dot_dimension_numbers<[1], [0], [0], [1], [0, 0, 1, 1], [], []>} : vector<128x256xf32>, vector<256x128xf32>, vector<128x128xf32> -> vector<128x128xf32>
    %14 = arith.addf %11, %13 : vector<128x128xf32>
    %c0_12 = arith.constant 0 : index
    %c0_13 = arith.constant 0 : index
    %15 = vector.load %arg8[%c0_12, %c0_13] : memref<128x128xf32, #tpu.memory_space<vmem>>, vector<128x128xf32>
    tpu.vector_store %arg8[%c0_12, %c0_13], %14 {strides = array<i32>} : memref<128x128xf32, #tpu.memory_space<vmem>>, vector<128x128xf32>,
    %c1_i32 = arith.constant 1 : i32
    %16 = arith.cmpi eq, %arg1, %c1_i32 : i32
    %17 = arith.extui %16 : i1 to i32
    %c0_i32_14 = arith.constant 0 : i32
    %18 = arith.cmpi ne, %17, %c0_i32_14 : i32
    scf.if %18 {
      %c0_15 = arith.constant 0 : index
      %c0_16 = arith.constant 0 : index
      %19 = vector.load %arg8[%c0_15, %c0_16] : memref<128x128xf32, #tpu.memory_space<vmem>>, vector<128x128xf32>
      %c0_17 = arith.constant 0 : index
      %c0_18 = arith.constant 0 : index
      %20 = vector.load %arg7[%c0_17, %c0_18] : memref<128x128xf32, #tpu.memory_space<vmem>>, vector<128x128xf32>
      tpu.vector_store %arg7[%c0_17, %c0_18], %19 {strides = array<i32>} : memref<128x128xf32, #tpu.memory_space<vmem>>, vector<128x128xf32>,
    } else {
    }
    return
  }
  func.func @transform_0(%arg0: i32, %arg1: i32) -> (i32, i32) {
    %c0_i32 = arith.constant 0 : i32
    %c0_i32_0 = arith.constant 0 : i32
    return %arg0, %c0_i32 : i32, i32
  }
  func.func @transform_1(%arg0: i32, %arg1: i32) -> (i32, i32) {
    %c0_i32 = arith.constant 0 : i32
    %c0_i32_0 = arith.constant 0 : i32
    return %c0_i32, %arg1 : i32, i32
  }
  func.func @transform_2(%arg0: i32, %arg1: i32) -> (i32, i32) {
    %c0_i32 = arith.constant 0 : i32
    %c0_i32_0 = arith.constant 0 : i32
    return %c0_i32, %arg1 : i32, i32
  }
  func.func @transform_3(%arg0: i32, %arg1: i32) -> (i32, i32) {
    %c0_i32 = arith.constant 0 : i32
    %c0_i32_0 = arith.constant 0 : i32
    return %arg1, %c0_i32 : i32, i32
  }
  func.func @transform_4(%arg0: i32, %arg1: i32) -> (i32, i32) {
    %c0_i32 = arith.constant 0 : i32
    %c0_i32_0 = arith.constant 0 : i32
    %c0_i32_1 = arith.constant 0 : i32
    return %c0_i32, %c0_i32_0 : i32, i32
  }
  func.func @transform_5(%arg0: i32, %arg1: i32) -> (i32, i32) {
    %c0_i32 = arith.constant 0 : i32
    %c0_i32_0 = arith.constant 0 : i32
    return %arg0, %c0_i32 : i32, i32
  }
}

</mosaic_0001>

<bundles_post_ra>
// kernel: tpu_custom_call.1
= control target key start
LH: loop header
LB: loop body
LE: loop exit
PB: predicated region body
PF: predicated region fallthrough
CT: control target
= control target key end

     0   :  { %s2131_s0 = inlined_call_operand.hbm [shape: f32[256,128], index: 0, kind: input, shape index: {}]   ;;  %s2132_s1 = inlined_call_operand.hbm [shape: f32[128,512], index: 1, kind: input, shape index: {}]   ;;  %s2133_s2 = inlined_call_operand.vmem [shape: f32[1,512], index: 2, kind: input, shape index: {}]   ;;  %s2134_s3 = inlined_call_operand.hbm [shape: f32[512,128], index: 3, kind: input, shape index: {}]   ;;  %s2135_s4 = inlined_call_operand.vmem [shape: f32[1,128], index: 4, kind: input, shape index: {}]   ;;  %s2136_s5 = inlined_call_operand.hbm [shape: f32[256,128], index: 5, kind: output, shape index: {}]  }
   0x1   :  { %2149 = sst [smem:[#allocation21_spill]] %s2132_s1 }
   0x2   :  { %2150 = sst [smem:[#allocation22_spill]] %s2135_s4 }
   0x3   :  { %2151 = sst [smem:[#allocation23_spill]] %s2136_s5 }
   0x4   :  { %10 = vsyncpa [#allocation4], 0 }
   0x5   :  { %12 = vsyncpa [#allocation4 + $0x1], 0 }
   0x6   :  { %13 = vsyncpa [#allocation7], 0 }
   0x7   :  { %15 = vsyncpa [#allocation7 + $0x1], 0 }
   0x8   :  { %16 = vsyncpa [#allocation5], 0 }
   0x9   :  { %18 = vsyncpa [#allocation5 + $0x1], 0  ;;  %s1601_s18 = smov 0   ;;  %s1603_s19 = smov 0  }
   0xa   :  { %s1605_s20 = smov 0   ;;  %s1607_s21 = smov 0  }
   0xb   :  { %s1609_s22 = smov 0   ;;  %s1611_s23 = smov 0  }
   0xc   :  { %s1613_s24 = smov 0   ;;  %s1615_s25 = smov 0  }
   0xd   :  { %s1617_s26 = smov 0   ;;  %s1619_s27 = smov 0  }
   0xe   :  { %s1621_s28 = smov 0  }
   0xf LB: > { %2152 = sst [smem:[#allocation13_spill]] %s1525_s20  ;;  %s33_s29 = sadd.s32 1, %s1549_s26  ;;  %s1557_s28 = sphi %s1621_s28, %s24_s28   ;;  %s1553_s27 = sphi %s1619_s27, %s2190_s27   ;;  %s1549_s26 = sphi %s1617_s26, %s2196_s26   ;;  %s1545_s25 = sphi %s1615_s25, %s2188_s25   ;;  %s1541_s24 = sphi %s1613_s24, %s2195_s24   ;;  %s1537_s23 = sphi %s1611_s23, %s2187_s23   ;;  %s1533_s22 = sphi %s1609_s22, %s2194_s22   ;;  %s1529_s21 = sphi %s1607_s21, %s2193_s21   ;;  %s1525_s20 = sphi %s1605_s20, %s2185_s20   ;;  %s1521_s19 = sphi %s1603_s19, %s2192_s19   ;;  %s1517_s18 = sphi %s1601_s18, %s2191_s18  }
  0x10   : > { %2153 = sst [smem:[#allocation14_spill]] %s1537_s23  ;;  %p2139_p0 = scmp.eq.s32.totalorder %s1557_s28, 0 }
  0x11   : > { %2154 = sst [smem:[#allocation15_spill]] %s1545_s25  ;;  %p1658_p1 = scmp.ge.s32.totalorder %s33_s29, 2 }
  0x12   : > { %2155 = sst [smem:[#allocation16_spill]] %s1553_s27  ;;  %s69_s6 = sadd.s32 1, %s1525_s20 }
  0x13   : > { %p76_p2 = scmp.ne.s32.totalorder %s1525_s20, %s1521_s19  ;;  %s2198_s29 = smov (%p1658_p1, %s33_s29), 0 }
  0x14   : > { %2157 = sst [smem:[#allocation17_spill]] %s2198_s29  ;;  %s66_s7 = ssub.s32 %s1549_s26, %s2198_s29 }
  0x15   : > { %p78_p4 = por %p76_p2, %p2139_p0  ;;  %p2138_p5 = scmp.lt.s32.totalorder %s1557_s28, 4 }
  0x16   : > { %p67_p6 = scmp.eq.s32.totalorder %s66_s7, 0  ;;  %s229_s8 = sand.u32 1, %s1557_s28  }
  0x17   : > { %s231_s9 = sand.u32 1, %s1525_s20   ;;  %s1074_s12 = sshll.u32 %s1549_s26, 8 }
  0x18   : > { %s1679_s10 = scalar_select %p67_p6, %s1525_s20, %s69_s6  }
  0x19   : > { %s1681_s11 = sshll.u32 %s231_s9, 8  ;;  %s2159_s1 = sld [smem:[#allocation21_spill]] }
  0x1a   : > { %2158 = sst [smem:[#allocation18_spill]] %s1679_s10  ;;  %s233_s16 = scalar_lea.vmem [#allocation6], %s1681_s11 }
  0x1b   : > { %s240_s17 = sshll.u32 %s233_s16, 4  ;;  %p1692_p7 = pnand %p2138_p5, %p78_p4  ;;  %s1696_s17 = int_to_ptr.vmem [resolvable:$true] %s240_s17 }
  0x1c   : > { %s1699_s6 = scalar_lea.sflag [#allocation7], %s229_s8 }
  0x1d   : > { %p2140_p10 = pneg %p1692_p7 }
  0x1f   : > { %s1687_s15 = scalar_lea.hbm %s2159_s1, %s1074_s12  ;;  %s1346_s14 = scalar_lea.hbm %s2159_s1, 8192 }
  0x20   : > { %s1341_s9 = scalar_lea.hbm %s1687_s15, 4096  ;;  %p1347_p13 = scmp.lt.u32.totalorder %s1687_s15, %s2159_s1 }
  0x21   : > { %p1342_p9 = scmp.ne.s32.totalorder %s1687_s15, %s1341_s9  ;;  %p1348_p2 = scmp.lt.u32.totalorder %s1346_s14, %s1341_s9 }
  0x22   : > { %p1350_p6 = scmp.lt.u32.totalorder %s1341_s9, %s1687_s15 }
  0x23   : > { %p1344_p11 = pnand %p2140_p10, %p1342_p9  ;;  %p1349_p4 = por %p1348_p2, %p1347_p13 }
  0x25   : > { %p1345_p12 = pneg %p1344_p11  ;;  %p1351_p5 = por %p1350_p6, %p1349_p4 }
  0x27   : > { %p1352_p3 = pnand %p1351_p5, %p1345_p12 }
  0x29   : > { %1355 = shalt.err (!%p1352_p3)
}
  0x2a   : > { %s1356_s8 = scalar_lea.vmem %s1696_s17, 4096  ;;  %s1559_s12 = smov [#allocation6]  }
  0x2b   : > { %p1357_p9 = scmp.ne.s32.totalorder %s1696_s17, %s1356_s8  ;;  %s1361_s13 = sshll.u32 %s1559_s12, 4  ;;  %s1362_s13 = int_to_ptr.vmem [resolvable:$false] %s1361_s13 }
  0x2c   : > { %s1363_s29 = scalar_lea.vmem %s1362_s13, 8192  ;;  %p1364_p8 = scmp.lt.s32.totalorder %s1696_s17, %s1362_s13 }
  0x2d   : > { %p1359_p11 = pnand %p1357_p9, %p2140_p10  ;;  %p1365_p13 = scmp.lt.s32.totalorder %s1363_s29, %s1356_s8 }
  0x2f   : > { %p1360_p0 = pneg %p1359_p11  ;;  %p1366_p2 = por %p1365_p13, %p1364_p8 }
  0x31   : > { %p1367_p4 = pnand %p1366_p2, %p1360_p0 }
  0x33   : > { %1370 = shalt.err (!%p1367_p4)
}
  0x34   : > { %s1560_s9 = smov 512   ;;  %s1561_s14 = smov 256  }
  0x35   : > { %s1562_s16 = smov 16   ;;  %p277_p0 = scmp.lt.s32.totalorder %s1557_s28, 5 }
  0x36   : > { %1235 = dma.hbm_to_vmem [thread:$0]  (!%p1692_p7), %s1687_s15, 4096, %s1696_s17, %s1699_s6, %s1560_s9, %s1561_s14, %s1562_s16  }
  0x37   : > { %p2161_p3 = scmp.ge.s32.totalorder %s1557_s28, 1  ;;  %s1735_s12 = sadd.s32 4294967295, %s1557_s28  }
  0x38   : > { %s1047_s13 = sadd.s32 4294967294, %s1557_s28   ;;  %s36_s29 = sadd.s32 1, %s1553_s27 }
  0x39   : > { %p1730_p5 = pnand %p2161_p3, %p277_p0  ;;  %s43_s1 = sadd.s32 1, %s1537_s23 }
  0x3a   : > { %s2200_s29 = smov (!%p1658_p1, %s36_s29), %s1553_s27  ;;  %p50_p8 = scmp.ne.s32.totalorder %s1537_s23, %s1533_s22 }
  0x3b   : > { %s2162_s8 = scalar_select %p1730_p5, 1, 0 }
  0x3c   : > { %p56_p12 = scmp.ne.s32.totalorder %s1533_s22, %s1529_s21  ;;  %p38_p6 = scmp.ge.s32.totalorder %s2200_s29, 2 }
  0x3d   : > { %p57_p9 = scmp.eq.s32.totalorder %s1735_s12, 0  ;;  %p2163_p11 = scmp.eq.s32.totalorder %s1557_s28, 0 }
  0x3e   : > { %p179_p2 = scmp.eq.s32.totalorder %s1735_s12, 3  ;;  %s2202_s29 = smov (%p38_p6, %s2200_s29), 0 }
  0x3f   : > { %p1750_p13 = por %p2163_p11, %p50_p8  ;;  %2165 = sst [smem:[#allocation19_spill]] %s2202_s29 }
  0x40   : > { %p1760_p1 = por %p57_p9, %p56_p12  ;;  %p2167_p4 = scmp.ne.s32.totalorder %s1521_s19, %s1517_s18 }
  0x41   : > { %s40_s9 = ssub.s32 %s1553_s27, %s2202_s29  ;;  %p1773_p3 = por %p179_p2, %p50_p8 }
  0x42   : > { %s2166_s30 = scalar_select %p1760_p1, 1, 0 }
  0x43   : > { %p1767_p0 = por %p2167_p4, %p57_p9  ;;  %p41_p11 = scmp.eq.s32.totalorder %s40_s9, 0 }
  0x44   : > { %s2169_s14 = scalar_select %p1773_p3, 1, 0 }
  0x45   : > { %s2168_s17 = scalar_select %p1767_p0, 1, 0 }
  0x46   : > { %p185_p10 = scmp.eq.s32.totalorder %s1047_s13, 3  ;;  %s208_s16 = sand.u32 1, %s1537_s23  }
  0x47   : > { %s1073_s10 = sshll.u32 %s1553_s27, 11  ;;  %s1050_s18 = sshll.u32 %s208_s16, 7 }
  0x48   : > { %s1780_s20 = scalar_select %p41_p11, %s1537_s23, %s43_s1  }
  0x49   : > { %p1785_p6 = por %p185_p10, %p56_p12  ;;  %s1792_s29 = scalar_lea.hbm %s2131_s0, %s1073_s10 }
  0x4a   : > { %2170 = sst [smem:[#allocation20_spill]] %s1780_s20  ;;  %p2172_p8 = scmp.lt.s32.totalorder %s1557_s28, 4 }
  0x4b   : > { %s2171_s5 = scalar_select %p1785_p6, 1, 0 }
  0x4c   : > { %p1798_p9 = pnand %p2172_p8, %p1750_p13  ;;  %s212_s13 = scalar_lea.vmem [#allocation3], %s1050_s18 }
  0x4d   : > { %s219_s9 = sshll.u32 %s212_s13, 4  ;;  %s1804_s27 = scalar_lea.sflag [#allocation4], %s208_s16  ;;  %s1802_s9 = int_to_ptr.vmem [resolvable:$true] %s219_s9 }
  0x4e   : > { %s1371_s4 = scalar_lea.hbm %s1792_s29, 2048  ;;  %p1373_p12 = pneg %p1798_p9 }
  0x4f   : > { %p1372_p10 = scmp.ne.s32.totalorder %s1792_s29, %s1371_s4  ;;  %s1376_s15 = scalar_lea.hbm %s2131_s0, 4096 }
  0x50   : > { %p1377_p13 = scmp.lt.u32.totalorder %s1792_s29, %s2131_s0  ;;  %p1378_p11 = scmp.lt.u32.totalorder %s1376_s15, %s1371_s4 }
  0x51   : > { %p1374_p2 = pnand %p1373_p12, %p1372_p10  ;;  %p1380_p6 = scmp.lt.u32.totalorder %s1371_s4, %s1792_s29 }
  0x52   : > { %p1379_p8 = por %p1378_p11, %p1377_p13 }
  0x53   : > { %p1375_p4 = pneg %p1374_p2 }
  0x54   : > { %p1381_p3 = por %p1380_p6, %p1379_p8 }
  0x56   : > { %p1382_p0 = pnand %p1381_p3, %p1375_p4 }
  0x58   : > { %1385 = shalt.err (!%p1382_p0)
}
  0x59   : > { %s1386_s16 = scalar_lea.vmem %s1802_s9, 2048  ;;  %s1563_s18 = smov [#allocation3]  }
  0x5a   : > { %p1387_p10 = scmp.ne.s32.totalorder %s1802_s9, %s1386_s16  ;;  %s1391_s13 = sshll.u32 %s1563_s18, 4  ;;  %s1392_s13 = int_to_ptr.vmem [resolvable:$false] %s1391_s13 }
  0x5b   : > { %s1393_s20 = scalar_lea.vmem %s1392_s13, 4096  ;;  %p1394_p5 = scmp.lt.s32.totalorder %s1802_s9, %s1392_s13 }
  0x5c   : > { %p1389_p2 = pnand %p1387_p10, %p1373_p12  ;;  %p1395_p13 = scmp.lt.s32.totalorder %s1393_s20, %s1386_s16 }
  0x5e   : > { %p1390_p1 = pneg %p1389_p2  ;;  %p1396_p11 = por %p1395_p13, %p1394_p5 }
  0x60   : > { %p1397_p6 = pnand %p1396_p11, %p1390_p1 }
  0x62   : > { %1400 = shalt.err (!%p1397_p6)
}
  0x63   : > { %s1564_s23 = smov 128   ;;  %s1565_s4 = smov 8  }
  0x64   : > { %1232 = dma.hbm_to_vmem [thread:$0]  (!%p1798_p9), %s1792_s29, 2048, %s1802_s9, %s1804_s27, %s1564_s23, %s1564_s23, %s1565_s4  }
  0x65   : > { %s1075_s25 = sshll.u32 %s1549_s26, 12  ;;  %s262_s10 = scalar_lea.vmem [#allocation8], %s1681_s11 }
  0x66   : > { %s269_s15 = sshll.u32 %s262_s10, 4  ;;  %s1840_s13 = scalar_lea.hbm %s2134_s3, %s1075_s25  ;;  %s1842_s15 = int_to_ptr.vmem [resolvable:$true] %s269_s15 }
  0x67   : > { %s1401_s20 = scalar_lea.hbm %s1840_s13, 4096  ;;  %p2174_p1 = pneg %p1692_p7 }
  0x68   : > { %p1402_p5 = scmp.ne.s32.totalorder %s1840_s13, %s1401_s20  ;;  %s1406_s29 = scalar_lea.hbm %s2134_s3, 8192 }
  0x69   : > { %p1407_p9 = scmp.lt.u32.totalorder %s1840_s13, %s2134_s3  ;;  %p1408_p12 = scmp.lt.u32.totalorder %s1406_s29, %s1401_s20 }
  0x6a   : > { %p1404_p0 = pnand %p1402_p5, %p2174_p1  ;;  %p1410_p8 = scmp.lt.u32.totalorder %s1401_s20, %s1840_s13 }
  0x6b   : > { %p1409_p4 = por %p1408_p12, %p1407_p9 }
  0x6c   : > { %p1405_p3 = pneg %p1404_p0 }
  0x6d   : > { %p1411_p10 = por %p1410_p8, %p1409_p4 }
  0x6f   : > { %p1412_p2 = pnand %p1411_p10, %p1405_p3 }
  0x71   : > { %1415 = shalt.err (!%p1412_p2)
}
  0x72   : > { %s1416_s25 = scalar_lea.vmem %s1842_s15, 4096  ;;  %p2175_p11 = pmov %p2174_p1 }
  0x73   : > { %p1417_p13 = scmp.ne.s32.totalorder %s1842_s15, %s1416_s25  ;;  %s1566_s10 = smov [#allocation8]  }
  0x74   : > { %s1421_s16 = sshll.u32 %s1566_s10, 4  ;;  %s1422_s16 = int_to_ptr.vmem [resolvable:$false] %s1421_s16 }
  0x75   : > { %p1419_p6 = pnand %p1417_p13, %p2175_p11  ;;  %s1423_s18 = scalar_lea.vmem %s1422_s16, 8192 }
  0x76   : > { %p1424_p1 = scmp.lt.s32.totalorder %s1842_s15, %s1422_s16  ;;  %p1425_p0 = scmp.lt.s32.totalorder %s1423_s18, %s1416_s25 }
  0x77   : > { %p1420_p5 = pneg %p1419_p6 }
  0x78   : > { %p1426_p9 = por %p1425_p0, %p1424_p1 }
  0x7a   : > { %p1427_p12 = pnand %p1426_p9, %p1420_p5 }
  0x7c   : > { %1430 = shalt.err (!%p1427_p12)
}
  0x7d   : > { %1238 = dma.hbm_to_vmem [thread:$0]  (!%p1692_p7), %s1840_s13, 4096, %s1842_s15, %s1699_s6, %s1564_s23, %s1564_s23, %s1565_s4  }
  0x7e   : > { %p2176_p3 = scmp.ne.s32.totalorder %s2162_s8, 0 }
  0x7f   : > { %s1874_s20 = sand.u32 (!%p2176_p3), 1, %s1533_s22   ;;  %p2177_p4 = scmp.ne.s32.totalorder (!%p2176_p3), %s2166_s30, 0 }
  0x80   : > { %281 = sbr.rel (%p2176_p3) target bundleno = 726 (0x2d6), region = 40  ;;  %s1060_s27 = sshll.u32 (!%p2176_p3), %s1874_s20, 7 }
  0x81   : > { %s284_s11 = scalar_lea.sflag (!%p2176_p3), [#allocation4], %s1874_s20  ;;  %s1878_s29 = scalar_lea.vmem (!%p2176_p3), [#allocation3], %s1060_s27 }
  0x87   : > { %1504 = dma.done.wait (%p2177_p4), %s284_s11, 2048  }
  0x88   : > { %1506 = vsyncadd (%p2177_p4), %s284_s11, 4294965248  ;;  %s292_s7 = sand.u32 1, %s1735_s12   ;;  %s294_s6 = sand.u32 1, %s1521_s19  }
  0x89   : > { %s1061_s8 = sshll.u32 %s294_s6, 8  ;;  %s293_s23 = scalar_lea.sflag [#allocation7], %s292_s7 }
  0x8a   : > { %s1886_s4 = scalar_lea.vmem [#allocation6], %s1061_s8  ;;  %p2178_p7 = scmp.ne.s32.totalorder %s2168_s17, 0 }
  0x8c   : > { %1508 = dma.done.wait (%p2178_p7), %s293_s23, 8192  }
  0x8d   : > { %1510 = vsyncadd (%p2178_p7), %s293_s23, 4294959104  ;;  %s1064_s15 = sshll.u32 %s1541_s24, 1  ;;  %s1899_s1 = scalar_lea.vmem [#allocation8], %s1061_s8 }
  0x8e   : > { %p349_p8 = scmp.lt.s32.totalorder %s1064_s15, 3  ;;  %s1901_s9 = scalar_lea.vmem [#allocation9], %s1060_s27 }
  0x8f   : > { %p1065_p10 = scmp.ne.s32.totalorder %s1541_s24, 0 }
  0x90   : > { %s2204_s15 = smov (!%p349_p8, %s1064_s15), 3  ;;  %s2179_s10 = sld [smem:[#allocation22_spill]] (!%p1065_p10) }
  0x91   : > { %s351_s12 = scalar_lea.vmem %s2133_s2, %s2204_s15  ;;  %358 = sbr.rel (%p1065_p10) target bundleno = 159 (0x9f), region = 56 }
  0x96   : > { %v1066_v0 = vld [vmem:[%s2179_s10] ss:$0 sm:$0xff] (!%p1065_p10) }
  0x97   : > { %366 = vst [vmem:[#allocation2] sm:$0xff] (!%p1065_p10), %v1066_v0  ;;  %367 = vst [vmem:[#allocation2 + $0x8] sm:$0xff] (!%p1065_p10), %v1066_v0 }
  0x98   : > { %368 = vst [vmem:[#allocation2 + $0x10] sm:$0xff] %v1066_v0  ;;  %369 = vst [vmem:[#allocation2 + $0x18] sm:$0xff] %v1066_v0 }
  0x99   : > { %370 = vst [vmem:[#allocation2 + $0x20] sm:$0xff] %v1066_v0  ;;  %371 = vst [vmem:[#allocation2 + $0x28] sm:$0xff] %v1066_v0 }
  0x9a   : > { %372 = vst [vmem:[#allocation2 + $0x30] sm:$0xff] %v1066_v0  ;;  %373 = vst [vmem:[#allocation2 + $0x38] sm:$0xff] %v1066_v0 }
  0x9b   : > { %374 = vst [vmem:[#allocation2 + $0x40] sm:$0xff] %v1066_v0  ;;  %375 = vst [vmem:[#allocation2 + $0x48] sm:$0xff] %v1066_v0 }
  0x9c   : > { %376 = vst [vmem:[#allocation2 + $0x50] sm:$0xff] %v1066_v0  ;;  %377 = vst [vmem:[#allocation2 + $0x58] sm:$0xff] %v1066_v0 }
  0x9d   : > { %378 = vst [vmem:[#allocation2 + $0x60] sm:$0xff] %v1066_v0  ;;  %379 = vst [vmem:[#allocation2 + $0x68] sm:$0xff] %v1066_v0 }
  0x9e   : > { %380 = vst [vmem:[#allocation2 + $0x70] sm:$0xff] %v1066_v0  ;;  %381 = vst [vmem:[#allocation2 + $0x78] sm:$0xff] %v1066_v0 }
  0x9f PF: > { %v399_v1 = vld [vmem:[%s1886_s4 + $0x8] sm:$0xff]  ;;  %v401_v2 = vld [vmem:[%s1886_s4 + $0x18] sm:$0xff]  ;;  %v398_v3 = vld [vmem:[%s1886_s4] sm:$0xff]  ;;  %v1567_v8 = vmov 0.0   ;;  %p1067_p2 = scmp.ne.s32.totalorder %s1541_s24, 1 }
  0xa0   : > { %v1157_v4 = vpack.c.bf16 %v401_v2, %v399_v1  ;;  %v400_v5 = vld [vmem:[%s1886_s4 + $0x10] sm:$0xff]  ;;  %v403_v6 = vld [vmem:[%s1886_s4 + $0x28] sm:$0xff]  ;;  %v405_v7 = vld [vmem:[%s1886_s4 + $0x38] sm:$0xff]  ;;  %506 = vmatprep.mubr.f32.mxu0 %v1567_v8 }
  0xa1   : > { %v1159_v9 = vpack.c.bf16 %v400_v5, %v398_v3  ;;  %v1161_v10 = vpack.c.bf16 %v405_v7, %v403_v6  ;;  %v402_v11 = vld [vmem:[%s1886_s4 + $0x20] sm:$0xff]  ;;  %v404_v12 = vld [vmem:[%s1886_s4 + $0x30] sm:$0xff]  ;;  %v407_v13 = vld [vmem:[%s1886_s4 + $0x48] sm:$0xff] }
  0xa2   : > { %1158 = vmatprep.subr.bf16.mxu0 %v1157_v4  ;;  %v409_v14 = vld [vmem:[%s1886_s4 + $0x58] sm:$0xff]  ;;  %v1163_v15 = vpack.c.bf16 %v404_v12, %v402_v11  ;;  %v406_v17 = vld [vmem:[%s1886_s4 + $0x40] sm:$0xff]  ;;  %v408_v18 = vld [vmem:[%s1886_s4 + $0x50] sm:$0xff] }
  0xa3   : > { %1160 = vmatpush1.bf16.msra.mxu0 %v1159_v9  ;;  %v1165_v16 = vpack.c.bf16 %v409_v14, %v407_v13  ;;  %v411_v19 = vld [vmem:[%s1886_s4 + $0x68] sm:$0xff]  ;;  %v413_v20 = vld [vmem:[%s1886_s4 + $0x78] sm:$0xff]  ;;  %v1167_v21 = vpack.c.bf16 %v408_v18, %v406_v17  ;;  %v410_v23 = vld [vmem:[%s1886_s4 + $0x60] sm:$0xff] }
  0xa4   : > { %1162 = vmatprep.subr.bf16.mxu0 %v1161_v10  ;;  %v1169_v22 = vpack.c.bf16 %v413_v20, %v411_v19  ;;  %v412_v24 = vld [vmem:[%s1886_s4 + $0x70] sm:$0xff]  ;;  %v415_v25 = vld [vmem:[%s1886_s4 + $0x88] sm:$0xff]  ;;  %v417_v26 = vld [vmem:[%s1886_s4 + $0x98] sm:$0xff] }
  0xa5   : > { %v1171_v27 = vpack.c.bf16 %v412_v24, %v410_v23  ;;  %v1173_v28 = vpack.c.bf16 %v417_v26, %v415_v25  ;;  %v414_v29 = vld [vmem:[%s1886_s4 + $0x80] sm:$0xff]  ;;  %v416_v30 = vld [vmem:[%s1886_s4 + $0x90] sm:$0xff]  ;;  %v419_v31 = vld [vmem:[%s1886_s4 + $0xa8] sm:$0xff] }
  0xa6   : > { %v421_v32 = vld [vmem:[%s1886_s4 + $0xb8] sm:$0xff]  ;;  %v418_v33 = vld [vmem:[%s1886_s4 + $0xa0] sm:$0xff]  ;;  %v420_v34 = vld [vmem:[%s1886_s4 + $0xb0] sm:$0xff]  ;;  %v1175_v35 = vpack.c.bf16 %v416_v30, %v414_v29 }
  0xa7   : > { %1164 = vmatpush1.bf16.msra.mxu0 %v1163_v15  ;;  %v423_v36 = vld [vmem:[%s1886_s4 + $0xc8] sm:$0xff]  ;;  %v425_v37 = vld [vmem:[%s1886_s4 + $0xd8] sm:$0xff]  ;;  %v667_v38 = vld [vmem:[%s1899_s1 + $0x80] sm:$0xff]  ;;  %v1177_v41 = vpack.c.bf16 %v421_v32, %v419_v31  ;;  %v1179_v52 = vpack.c.bf16 %v420_v34, %v418_v33 }
  0xa8   : > { %1166 = vmatprep.subr.bf16.mxu0 %v1165_v16  ;;  %v668_v39 = vld [vmem:[%s1899_s1 + $0x88] sm:$0xff]  ;;  %v651_v40 = vld [vmem:[%s1899_s1] sm:$0xff]  ;;  %v669_v44 = vld [vmem:[%s1899_s1 + $0x90] sm:$0xff]  ;;  %v1181_v56 = vpack.c.bf16 %v425_v37, %v423_v36 }
  0xa9   : > { %v1189_v42 = vpack.c.bf16 %v668_v39, %v667_v38  ;;  %v652_v43 = vld [vmem:[%s1899_s1 + $0x8] sm:$0xff]  ;;  %v670_v45 = vld [vmem:[%s1899_s1 + $0x98] sm:$0xff]  ;;  %v653_v48 = vld [vmem:[%s1899_s1 + $0x10] sm:$0xff] }
  0xaa   : > { %v1191_v46 = vpack.c.bf16 %v652_v43, %v651_v40  ;;  %v1193_v47 = vpack.c.bf16 %v670_v45, %v669_v44  ;;  %v654_v49 = vld [vmem:[%s1899_s1 + $0x18] sm:$0xff]  ;;  %v671_v50 = vld [vmem:[%s1899_s1 + $0xa0] sm:$0xff]  ;;  %v672_v51 = vld [vmem:[%s1899_s1 + $0xa8] sm:$0xff] }
  0xab   : > { %1168 = vmatpush1.bf16.msra.mxu0 %v1167_v21  ;;  %1190 = vmatprep.subr.bf16.mxu1 %v1189_v42  ;;  %v422_v53 = vld [vmem:[%s1886_s4 + $0xc0] sm:$0xff]  ;;  %v424_v54 = vld [vmem:[%s1886_s4 + $0xd0] sm:$0xff]  ;;  %v1195_v55 = vpack.c.bf16 %v654_v49, %v653_v48  ;;  %v427_v57 = vld [vmem:[%s1886_s4 + $0xe8] sm:$0xff]  ;;  %v1197_v58 = vpack.c.bf16 %v672_v51, %v671_v50  ;;  %v432_v51 = vlaneseq }
  0xac   : > { %1170 = vmatprep.subr.bf16.mxu0 %v1169_v22  ;;  %1192 = vmatpush3.bf16.msra.mxu1 %v1191_v46  ;;  %v655_v59 = vld [vmem:[%s1899_s1 + $0x20] sm:$0xff]  ;;  %v656_v60 = vld [vmem:[%s1899_s1 + $0x28] sm:$0xff]  ;;  %v429_v61 = vld [vmem:[%s1886_s4 + $0xf8] sm:$0xff]  ;;  %v1183_v0 = vpack.c.bf16 %v424_v54, %v422_v53 }
  0xad   : > { %1194 = vmatprep.subr.bf16.mxu1 %v1193_v47  ;;  %v673_v62 = vld [vmem:[%s1899_s1 + $0xb0] sm:$0xff]  ;;  %v674_v63 = vld [vmem:[%s1899_s1 + $0xb8] sm:$0xff]  ;;  %v426_v1 = vld [vmem:[%s1886_s4 + $0xe0] sm:$0xff]  ;;  %v1199_v2 = vpack.c.bf16 %v656_v60, %v655_v59  ;;  %v1185_v3 = vpack.c.bf16 %v429_v61, %v427_v57 }
  0xae   : > { %v428_v4 = vld [vmem:[%s1886_s4 + $0xf0] sm:$0xff]  ;;  %v1201_v5 = vpack.c.bf16 %v674_v63, %v673_v62  ;;  %v658_v7 = vld [vmem:[%s1899_s1 + $0x38] sm:$0xff]  ;;  %v675_v9 = vld [vmem:[%s1899_s1 + $0xc0] sm:$0xff] }
  0xaf   : > { %1172 = vmatpush1.bf16.msra.mxu0 %v1171_v27  ;;  %v657_v6 = vld [vmem:[%s1899_s1 + $0x30] sm:$0xff]  ;;  %v676_v10 = vld [vmem:[%s1899_s1 + $0xc8] sm:$0xff]  ;;  %v1187_v11 = vpack.c.bf16 %v428_v4, %v426_v1  ;;  %v659_v14 = vld [vmem:[%s1899_s1 + $0x40] sm:$0xff] }
  0xb0   : > { %1174 = vmatprep.subr.bf16.mxu0 %v1173_v28  ;;  %1196 = vmatpush3.bf16.msra.mxu1 %v1195_v55  ;;  %v1203_v12 = vpack.c.bf16 %v658_v7, %v657_v6  ;;  %v1205_v13 = vpack.c.bf16 %v676_v10, %v675_v9  ;;  %v660_v15 = vld [vmem:[%s1899_s1 + $0x48] sm:$0xff]  ;;  %v677_v16 = vld [vmem:[%s1899_s1 + $0xd0] sm:$0xff]  ;;  %v678_v17 = vld [vmem:[%s1899_s1 + $0xd8] sm:$0xff] }
  0xb1   : > { %1198 = vmatprep.subr.bf16.mxu1 %v1197_v58  ;;  %v382_v18 = vld [vmem:[%s1878_s29] sm:$0xff]  ;;  %v1207_v19 = vpack.c.bf16 %v660_v15, %v659_v14  ;;  %v1209_v20 = vpack.c.bf16 %v678_v17, %v677_v16  ;;  %v661_v21 = vld [vmem:[%s1899_s1 + $0x50] sm:$0xff]  ;;  %v662_v22 = vld [vmem:[%s1899_s1 + $0x58] sm:$0xff] }
  0xb2   : > { %v679_v23 = vld [vmem:[%s1899_s1 + $0xe0] sm:$0xff]  ;;  %v680_v24 = vld [vmem:[%s1899_s1 + $0xe8] sm:$0xff]  ;;  %v1211_v26 = vpack.c.bf16 %v662_v22, %v661_v21  ;;  %v384_v28 = vld [vmem:[%s1878_s29 + $0x10] sm:$0xff] }
  0xb3   : > { %1176 = vmatpush1.bf16.msra.mxu0 %v1175_v35  ;;  %v383_v25 = vld [vmem:[%s1878_s29 + $0x8] sm:$0xff]  ;;  %v1213_v27 = vpack.c.bf16 %v680_v24, %v679_v23  ;;  %v385_v29 = vld [vmem:[%s1878_s29 + $0x18] sm:$0xff]  ;;  %v386_v30 = vld [vmem:[%s1878_s29 + $0x20] sm:$0xff] }
  0xb4   : > { %1178 = vmatprep.subr.bf16.mxu0 %v1177_v41  ;;  %1200 = vmatpush3.bf16.msra.mxu1 %v1199_v2  ;;  %v387_v31 = vld [vmem:[%s1878_s29 + $0x28] sm:$0xff]  ;;  %v388_v32 = vld [vmem:[%s1878_s29 + $0x30] sm:$0xff]  ;;  %v389_v33 = vld [vmem:[%s1878_s29 + $0x38] sm:$0xff] }
  0xb5   : > { %1202 = vmatprep.subr.bf16.mxu1 %v1201_v5  ;;  %v390_v34 = vld [vmem:[%s1878_s29 + $0x40] sm:$0xff]  ;;  %v391_v35 = vld [vmem:[%s1878_s29 + $0x48] sm:$0xff]  ;;  %v392_v36 = vld [vmem:[%s1878_s29 + $0x50] sm:$0xff] }
  0xb6   : > { %v393_v37 = vld [vmem:[%s1878_s29 + $0x58] sm:$0xff]  ;;  %v394_v38 = vld [vmem:[%s1878_s29 + $0x60] sm:$0xff]  ;;  %v395_v39 = vld [vmem:[%s1878_s29 + $0x68] sm:$0xff] }
  0xb7   : > { %1180 = vmatpush1.bf16.msra.mxu0 %v1179_v52  ;;  %v396_v40 = vld [vmem:[%s1878_s29 + $0x70] sm:$0xff]  ;;  %v397_v41 = vld [vmem:[%s1878_s29 + $0x78] sm:$0xff]  ;;  %v663_v42 = vld [vmem:[%s1899_s1 + $0x60] sm:$0xff]  ;;  %v433_v52 = vshrl.u32 %v432_v51, 7 }
  0xb8   : > { %1182 = vmatprep.subr.bf16.mxu0 %v1181_v56  ;;  %1204 = vmatpush3.bf16.msra.mxu1 %v1203_v12  ;;  %v664_v43 = vld [vmem:[%s1899_s1 + $0x68] sm:$0xff]  ;;  %v681_v45 = vld [vmem:[%s1899_s1 + $0xf0] sm:$0xff]  ;;  %v682_v46 = vld [vmem:[%s1899_s1 + $0xf8] sm:$0xff] }
  0xb9   : > { %1206 = vmatprep.subr.bf16.mxu1 %v1205_v13  ;;  %v1215_v44 = vpack.c.bf16 %v664_v43, %v663_v42  ;;  %v1217_v47 = vpack.c.bf16 %v682_v46, %v681_v45  ;;  %v665_v48 = vld [vmem:[%s1899_s1 + $0x70] sm:$0xff]  ;;  %v666_v49 = vld [vmem:[%s1899_s1 + $0x78] sm:$0xff]  ;;  %v434_v53 = vsub.s32 0, %v433_v52  ;;  %v438_v54 = vsub.s32 1, %v433_v52 }
  0xba   : > { %v1219_v50 = vpack.c.bf16 %v666_v49, %v665_v48 }
  0xbb   : > { %1184 = vmatpush1.bf16.msra.mxu0 %v1183_v0 }
  0xbc   : > { %1186 = vmatprep.subr.bf16.mxu0 %v1185_v3  ;;  %1208 = vmatpush3.bf16.msra.mxu1 %v1207_v19 }
  0xbd   : > { %1210 = vmatprep.subr.bf16.mxu1 %v1209_v20 }
  0xbf   : > { %1188 = vmatpush1.bf16.msra.mxu0 %v1187_v11 }
  0xc0   : > { %1212 = vmatpush3.bf16.msra.mxu1 %v1211_v26 }
  0xc1   : > { %1214 = vmatprep.subr.bf16.mxu1 %v1213_v27 }
  0xc2   : > { %507 = vmatmul.mubr.f32.vlgmr.msra.gmra.mrb[0].mxu0 %v382_v18 }
  0xc3   : > { %512 = vmatprep.mubr.f32.mxu0 %v1567_v8 }
  0xc4   : > { %1216 = vmatpush3.bf16.msra.mxu1 %v1215_v44 }
  0xc5   : > { %1218 = vmatprep.subr.bf16.mxu1 %v1217_v47 }
  0xc6   : > { %513 = vmatmul.mubr.f32.gmra.mrb[2].mxu0 %v383_v25 }
  0xc7   : > { %518 = vmatprep.mubr.f32.mxu0 %v1567_v8 }
  0xc8   : > { %1220 = vmatpush3.bf16.msra.mxu1 %v1219_v50 }
  0xca   : > { %519 = vmatmul.mubr.f32.gmra.mrb[4].mxu0 %v384_v28 }
  0xcb   : > { %524 = vmatprep.mubr.f32.mxu0 %v1567_v8 }
  0xce   : > { %525 = vmatmul.mubr.f32.gmra.mrb[6].mxu0 %v385_v29 }
  0xcf   : > { %530 = vmatprep.mubr.f32.mxu0 %v1567_v8 }
  0xd2   : > { %531 = vmatmul.mubr.f32.gmra.mrb[8].mxu0 %v386_v30 }
  0xd3   : > { %536 = vmatprep.mubr.f32.mxu0 %v1567_v8 }
  0xd6   : > { %537 = vmatmul.mubr.f32.gmra.mrb[10].mxu0 %v387_v31 }
  0xd7   : > { %542 = vmatprep.mubr.f32.mxu0 %v1567_v8 }
  0xda   : > { %543 = vmatmul.mubr.f32.gmra.mrb[12].mxu0 %v388_v32 }
  0xdb   : > { %548 = vmatprep.mubr.f32.mxu0 %v1567_v8 }
  0xde   : > { %549 = vmatmul.mubr.f32.gmra.mrb[14].mxu0 %v389_v33 }
  0xdf   : > { %554 = vmatprep.mubr.f32.mxu0 %v1567_v8 }
  0xe2   : > { %555 = vmatmul.mubr.f32.gmra.mrb[16].mxu0 %v390_v34 }
  0xe3   : > { %560 = vmatprep.mubr.f32.mxu0 %v1567_v8 }
  0xe6   : > { %561 = vmatmul.mubr.f32.gmra.mrb[18].mxu0 %v391_v35 }
  0xe7   : > { %566 = vmatprep.mubr.f32.mxu0 %v1567_v8 }
  0xea   : > { %567 = vmatmul.mubr.f32.gmra.mrb[20].mxu0 %v392_v36 }
  0xeb   : > { %572 = vmatprep.mubr.f32.mxu0 %v1567_v8 }
  0xee   : > { %573 = vmatmul.mubr.f32.gmra.mrb[22].mxu0 %v393_v37 }
  0xef   : > { %578 = vmatprep.mubr.f32.mxu0 %v1567_v8 }
  0xf2   : > { %579 = vmatmul.mubr.f32.gmra.mrb[24].mxu0 %v394_v38 }
  0xf3   : > { %584 = vmatprep.mubr.f32.mxu0 %v1567_v8 }
  0xf6   : > { %585 = vmatmul.mubr.f32.gmra.mrb[26].mxu0 %v395_v39 }
  0xf7   : > { %590 = vmatprep.mubr.f32.mxu0 %v1567_v8 }
  0xfa   : > { %591 = vmatmul.mubr.f32.gmra.mrb[28].mxu0 %v396_v40 }
  0xfb   : > { %596 = vmatprep.mubr.f32.mxu0 %v1567_v8  ;;  %v430_v8 = vld [vmem:[%s351_s12] sm:$0x3] }
  0xfc   : > { %v2008_v55 = vrot.slane %v430_v8, %v434_v53  ;;  %v2010_v56 = vrot.slane %v430_v8, %v438_v54 }
  0xfe   : > { %597 = vmatmul.mubr.f32.gmra.mrb[30].mxu0 %v397_v41 }
 0x195   : > { %v508_v57 = vpop.f32.mrb[0].mxu0 }
 0x196   : > { %v509_v58 = vadd.f32 %v508_v57, %v2008_v55  ;;  %v510_v59 = vpop.f32.mrb[1].mxu0 }
 0x197   : > { %v511_v60 = vadd.f32 %v510_v59, %v2010_v56 }
 0x198   : > { %v603_v63 = vmax.f32 %v509_v58, 0.0 }
 0x199   : > { %v514_v61 = vpop.f32.mrb[2].mxu0  ;;  %v604_v62 = vmax.f32 %v511_v60, 0.0 }
 0x19a   : > { %v515_v0 = vadd.f32 %v514_v61, %v2008_v55  ;;  %v516_v1 = vpop.f32.mrb[3].mxu0 }
 0x19b   : > { %v517_v2 = vadd.f32 %v516_v1, %v2010_v56  ;;  %747 = vmatprep.mubr.f32.mxu1 %v604_v62 }
 0x19c   : > { %748 = vmatmul.mubr.f32.vlgmr.msra.gmra.mrb[0].mxu1 %v603_v63  ;;  %v605_v5 = vmax.f32 %v515_v0, 0.0 }
 0x19d   : > { %v606_v3 = vmax.f32 %v517_v2, 0.0  ;;  %v520_v4 = vpop.f32.mrb[4].mxu0 }
 0x19e   : > { %v521_v6 = vadd.f32 %v520_v4, %v2008_v55  ;;  %v522_v7 = vpop.f32.mrb[5].mxu0 }
 0x19f   : > { %v523_v9 = vadd.f32 %v522_v7, %v2010_v56  ;;  %752 = vmatprep.mubr.f32.mxu1 %v606_v3 }
 0x1a0   : > { %753 = vmatmul.mubr.f32.gmra.mrb[2].mxu1 %v605_v5  ;;  %v607_v12 = vmax.f32 %v521_v6, 0.0 }
 0x1a1   : > { %v608_v10 = vmax.f32 %v523_v9, 0.0  ;;  %v526_v11 = vpop.f32.mrb[6].mxu0 }
 0x1a2   : > { %v527_v13 = vadd.f32 %v526_v11, %v2008_v55  ;;  %v528_v14 = vpop.f32.mrb[7].mxu0 }
 0x1a3   : > { %v529_v15 = vadd.f32 %v528_v14, %v2010_v56  ;;  %757 = vmatprep.mubr.f32.mxu1 %v608_v10 }
 0x1a4   : > { %758 = vmatmul.mubr.f32.gmra.mrb[4].mxu1 %v607_v12  ;;  %v609_v18 = vmax.f32 %v527_v13, 0.0 }
 0x1a5   : > { %v610_v16 = vmax.f32 %v529_v15, 0.0  ;;  %v532_v17 = vpop.f32.mrb[8].mxu0 }
 0x1a6   : > { %v533_v19 = vadd.f32 %v532_v17, %v2008_v55  ;;  %v534_v20 = vpop.f32.mrb[9].mxu0 }
 0x1a7   : > { %v535_v21 = vadd.f32 %v534_v20, %v2010_v56  ;;  %762 = vmatprep.mubr.f32.mxu1 %v610_v16 }
 0x1a8   : > { %763 = vmatmul.mubr.f32.gmra.mrb[6].mxu1 %v609_v18  ;;  %v611_v24 = vmax.f32 %v533_v19, 0.0 }
 0x1a9   : > { %v612_v22 = vmax.f32 %v535_v21, 0.0  ;;  %v538_v23 = vpop.f32.mrb[10].mxu0 }
 0x1aa   : > { %v539_v25 = vadd.f32 %v538_v23, %v2008_v55  ;;  %v540_v26 = vpop.f32.mrb[11].mxu0 }
 0x1ab   : > { %v541_v27 = vadd.f32 %v540_v26, %v2010_v56  ;;  %767 = vmatprep.mubr.f32.mxu1 %v612_v22 }
 0x1ac   : > { %768 = vmatmul.mubr.f32.gmra.mrb[8].mxu1 %v611_v24  ;;  %v613_v30 = vmax.f32 %v539_v25, 0.0 }
 0x1ad   : > { %v614_v28 = vmax.f32 %v541_v27, 0.0  ;;  %v544_v29 = vpop.f32.mrb[12].mxu0 }
 0x1ae   : > { %v545_v31 = vadd.f32 %v544_v29, %v2008_v55  ;;  %v546_v32 = vpop.f32.mrb[13].mxu0  ;;  %v635_v29 = vld [vmem:[#allocation2] sm:$0xff] }
 0x1af   : > { %v547_v33 = vadd.f32 %v546_v32, %v2010_v56  ;;  %772 = vmatprep.mubr.f32.mxu1 %v614_v28 }
 0x1b0   : > { %773 = vmatmul.mubr.f32.gmra.mrb[10].mxu1 %v613_v30  ;;  %v615_v36 = vmax.f32 %v545_v31, 0.0 }
 0x1b1   : > { %v616_v34 = vmax.f32 %v547_v33, 0.0  ;;  %v550_v35 = vpop.f32.mrb[14].mxu0 }
 0x1b2   : > { %v551_v37 = vadd.f32 %v550_v35, %v2008_v55  ;;  %v552_v38 = vpop.f32.mrb[15].mxu0 }
 0x1b3   : > { %v553_v39 = vadd.f32 %v552_v38, %v2010_v56  ;;  %777 = vmatprep.mubr.f32.mxu1 %v616_v34  ;;  %v636_v34 = vld [vmem:[#allocation2 + $0x8] sm:$0xff]  ;;  %v637_v38 = vld [vmem:[#allocation2 + $0x10] sm:$0xff] }
 0x1b4   : > { %778 = vmatmul.mubr.f32.gmra.mrb[12].mxu1 %v615_v36  ;;  %v617_v42 = vmax.f32 %v551_v37, 0.0 }
 0x1b5   : > { %v618_v40 = vmax.f32 %v553_v39, 0.0  ;;  %v556_v41 = vpop.f32.mrb[16].mxu0 }
 0x1b6   : > { %v557_v43 = vadd.f32 %v556_v41, %v2008_v55  ;;  %v558_v44 = vpop.f32.mrb[17].mxu0 }
 0x1b7   : > { %v559_v45 = vadd.f32 %v558_v44, %v2010_v56  ;;  %782 = vmatprep.mubr.f32.mxu1 %v618_v40 }
 0x1b8   : > { %783 = vmatmul.mubr.f32.gmra.mrb[14].mxu1 %v617_v42  ;;  %v619_v48 = vmax.f32 %v557_v43, 0.0  ;;  %v638_v42 = vld [vmem:[#allocation2 + $0x18] sm:$0xff] }
 0x1b9   : > { %v620_v46 = vmax.f32 %v559_v45, 0.0  ;;  %v562_v47 = vpop.f32.mrb[18].mxu0 }
 0x1ba   : > { %v563_v49 = vadd.f32 %v562_v47, %v2008_v55  ;;  %v564_v50 = vpop.f32.mrb[19].mxu0  ;;  %v639_v47 = vld [vmem:[#allocation2 + $0x20] sm:$0xff] }
 0x1bb   : > { %v565_v51 = vadd.f32 %v564_v50, %v2010_v56  ;;  %787 = vmatprep.mubr.f32.mxu1 %v620_v46 }
 0x1bc   : > { %788 = vmatmul.mubr.f32.gmra.mrb[16].mxu1 %v619_v48  ;;  %v621_v8 = vmax.f32 %v563_v49, 0.0 }
 0x1bd   : > { %v622_v52 = vmax.f32 %v565_v51, 0.0  ;;  %v568_v53 = vpop.f32.mrb[20].mxu0 }
 0x1be   : > { %v569_v54 = vadd.f32 %v568_v53, %v2008_v55  ;;  %v570_v57 = vpop.f32.mrb[21].mxu0 }
 0x1bf   : > { %v571_v58 = vadd.f32 %v570_v57, %v2010_v56  ;;  %792 = vmatprep.mubr.f32.mxu1 %v622_v52  ;;  %v640_v52 = vld [vmem:[#allocation2 + $0x28] sm:$0xff] }
 0x1c0   : > { %793 = vmatmul.mubr.f32.gmra.mrb[18].mxu1 %v621_v8  ;;  %v623_v61 = vmax.f32 %v569_v54, 0.0 }
 0x1c1   : > { %v624_v59 = vmax.f32 %v571_v58, 0.0  ;;  %v574_v60 = vpop.f32.mrb[22].mxu0  ;;  %v641_v58 = vld [vmem:[#allocation2 + $0x30] sm:$0xff] }
 0x1c2   : > { %v575_v62 = vadd.f32 %v574_v60, %v2008_v55  ;;  %v576_v63 = vpop.f32.mrb[23].mxu0 }
 0x1c3   : > { %v577_v0 = vadd.f32 %v576_v63, %v2010_v56  ;;  %797 = vmatprep.mubr.f32.mxu1 %v624_v59  ;;  %v642_v63 = vld [vmem:[#allocation2 + $0x38] sm:$0xff] }
 0x1c4   : > { %798 = vmatmul.mubr.f32.gmra.mrb[20].mxu1 %v623_v61  ;;  %v625_v3 = vmax.f32 %v575_v62, 0.0 }
 0x1c5   : > { %v626_v1 = vmax.f32 %v577_v0, 0.0  ;;  %v580_v2 = vpop.f32.mrb[24].mxu0 }
 0x1c6   : > { %v581_v4 = vadd.f32 %v580_v2, %v2008_v55  ;;  %v582_v5 = vpop.f32.mrb[25].mxu0 }
 0x1c7   : > { %v583_v6 = vadd.f32 %v582_v5, %v2010_v56  ;;  %802 = vmatprep.mubr.f32.mxu1 %v626_v1 }
 0x1c8   : > { %803 = vmatmul.mubr.f32.gmra.mrb[22].mxu1 %v625_v3  ;;  %v627_v10 = vmax.f32 %v581_v4, 0.0  ;;  %v643_v4 = vld [vmem:[#allocation2 + $0x40] sm:$0xff] }
 0x1c9   : > { %v628_v7 = vmax.f32 %v583_v6, 0.0  ;;  %v586_v9 = vpop.f32.mrb[26].mxu0 }
 0x1ca   : > { %v587_v11 = vadd.f32 %v586_v9, %v2008_v55  ;;  %v588_v12 = vpop.f32.mrb[27].mxu0 }
 0x1cb   : > { %v589_v13 = vadd.f32 %v588_v12, %v2010_v56  ;;  %807 = vmatprep.mubr.f32.mxu1 %v628_v7 }
 0x1cc   : > { %808 = vmatmul.mubr.f32.gmra.mrb[24].mxu1 %v627_v10  ;;  %v629_v16 = vmax.f32 %v587_v11, 0.0  ;;  %v644_v10 = vld [vmem:[#allocation2 + $0x48] sm:$0xff] }
 0x1cd   : > { %v630_v14 = vmax.f32 %v589_v13, 0.0  ;;  %v592_v15 = vpop.f32.mrb[28].mxu0 }
 0x1ce   : > { %v593_v17 = vadd.f32 %v592_v15, %v2008_v55  ;;  %v594_v18 = vpop.f32.mrb[29].mxu0  ;;  %v645_v15 = vld [vmem:[#allocation2 + $0x50] sm:$0xff] }
 0x1cf   : > { %v595_v19 = vadd.f32 %v594_v18, %v2010_v56  ;;  %812 = vmatprep.mubr.f32.mxu1 %v630_v14 }
 0x1d0   : > { %813 = vmatmul.mubr.f32.gmra.mrb[26].mxu1 %v629_v16  ;;  %v631_v22 = vmax.f32 %v593_v17, 0.0 }
 0x1d1   : > { %v632_v20 = vmax.f32 %v595_v19, 0.0  ;;  %v598_v21 = vpop.f32.mrb[30].mxu0 }
 0x1d2   : > { %v599_v23 = vadd.f32 %v598_v21, %v2008_v55  ;;  %v600_v24 = vpop.f32.mrb[31].mxu0 }
 0x1d3   : > { %v601_v25 = vadd.f32 %v600_v24, %v2010_v56  ;;  %817 = vmatprep.mubr.f32.mxu1 %v632_v20  ;;  %v646_v20 = vld [vmem:[#allocation2 + $0x58] sm:$0xff] }
 0x1d4   : > { %818 = vmatmul.mubr.f32.gmra.mrb[28].mxu1 %v631_v22  ;;  %v633_v27 = vmax.f32 %v599_v23, 0.0 }
 0x1d5   : > { %v634_v26 = vmax.f32 %v601_v25, 0.0  ;;  %v647_v25 = vld [vmem:[#allocation2 + $0x60] sm:$0xff] }
 0x1d7   : > { %822 = vmatprep.mubr.f32.mxu1 %v634_v26 }
 0x1d8   : > { %823 = vmatmul.mubr.f32.gmra.mrb[30].mxu1 %v633_v27 }
 0x26f   : > { %v1109_v28 = vpop.f32.mrb[0].mxu1 }
 0x270   : > { %v1110_v30 = vpop.f32.mrb[1].mxu1 }
 0x271   : > { %v1111_v31 = vadd.f32 %v1110_v30, %v1109_v28  ;;  %v648_v30 = vld [vmem:[#allocation2 + $0x68] sm:$0xff] }
 0x273   : > { %v828_v32 = vadd.f32 %v1111_v31, %v635_v29  ;;  %v1112_v33 = vpop.f32.mrb[2].mxu1 }
 0x274   : > { %v1113_v35 = vpop.f32.mrb[3].mxu1 }
 0x275   : > { %844 = vst [vmem:[#allocation2] sm:$0xff] %v828_v32  ;;  %v1114_v36 = vadd.f32 %v1113_v35, %v1112_v33  ;;  %v649_v35 = vld [vmem:[#allocation2 + $0x70] sm:$0xff] }
 0x277   : > { %v829_v55 = vadd.f32 %v1114_v36, %v636_v34  ;;  %v1115_v37 = vpop.f32.mrb[4].mxu1 }
 0x278   : > { %v1116_v56 = vpop.f32.mrb[5].mxu1 }
 0x279   : > { %845 = vst [vmem:[#allocation2 + $0x8] sm:$0xff] %v829_v55  ;;  %v1117_v39 = vadd.f32 %v1116_v56, %v1115_v37  ;;  %v650_v56 = vld [vmem:[#allocation2 + $0x78] sm:$0xff] }
 0x27b   : > { %v830_v40 = vadd.f32 %v1117_v39, %v637_v38  ;;  %v1118_v41 = vpop.f32.mrb[6].mxu1 }
 0x27c   : > { %v1119_v43 = vpop.f32.mrb[7].mxu1 }
 0x27d   : > { %846 = vst [vmem:[#allocation2 + $0x10] sm:$0xff] %v830_v40  ;;  %v1120_v44 = vadd.f32 %v1119_v43, %v1118_v41 }
 0x27f   : > { %v831_v45 = vadd.f32 %v1120_v44, %v638_v42  ;;  %v1121_v46 = vpop.f32.mrb[8].mxu1  ;;  %v864_v42 = vld [vmem:[#allocation2] sm:$0xff] (!%p1067_p2) }
 0x280   : > { %v1122_v48 = vpop.f32.mrb[9].mxu1  ;;  %v865_v43 = vld [vmem:[#allocation2 + $0x8] sm:$0xff] (!%p1067_p2)  ;;  %880 = vst [vmem:[%s1901_s9] sm:$0xff] (!%p1067_p2), %v864_v42 }
 0x281   : > { %847 = vst [vmem:[#allocation2 + $0x18] sm:$0xff] %v831_v45  ;;  %v1123_v49 = vadd.f32 %v1122_v48, %v1121_v46  ;;  %881 = vst [vmem:[%s1901_s9 + $0x8] sm:$0xff] (!%p1067_p2), %v865_v43 }
 0x283   : > { %v832_v50 = vadd.f32 %v1123_v49, %v639_v47  ;;  %v1124_v51 = vpop.f32.mrb[10].mxu1 }
 0x284   : > { %v1125_v53 = vpop.f32.mrb[11].mxu1  ;;  %v866_v44 = vld [vmem:[#allocation2 + $0x10] sm:$0xff] (!%p1067_p2) }
 0x285   : > { %848 = vst [vmem:[#allocation2 + $0x20] sm:$0xff] %v832_v50  ;;  %v1126_v8 = vadd.f32 %v1125_v53, %v1124_v51  ;;  %882 = vst [vmem:[%s1901_s9 + $0x10] sm:$0xff] (!%p1067_p2), %v866_v44 }
 0x287   : > { %v833_v54 = vadd.f32 %v1126_v8, %v640_v52  ;;  %v1127_v57 = vpop.f32.mrb[12].mxu1 }
 0x288   : > { %v1128_v59 = vpop.f32.mrb[13].mxu1  ;;  %v867_v45 = vld [vmem:[#allocation2 + $0x18] sm:$0xff] (!%p1067_p2) }
 0x289   : > { %849 = vst [vmem:[#allocation2 + $0x28] sm:$0xff] %v833_v54  ;;  %v1129_v60 = vadd.f32 %v1128_v59, %v1127_v57  ;;  %883 = vst [vmem:[%s1901_s9 + $0x18] sm:$0xff] (!%p1067_p2), %v867_v45 }
 0x28b   : > { %v834_v61 = vadd.f32 %v1129_v60, %v641_v58  ;;  %v1130_v62 = vpop.f32.mrb[14].mxu1 }
 0x28c   : > { %v1131_v0 = vpop.f32.mrb[15].mxu1  ;;  %v868_v46 = vld [vmem:[#allocation2 + $0x20] sm:$0xff] (!%p1067_p2) }
 0x28d   : > { %850 = vst [vmem:[#allocation2 + $0x30] sm:$0xff] %v834_v61  ;;  %v1132_v1 = vadd.f32 %v1131_v0, %v1130_v62  ;;  %884 = vst [vmem:[%s1901_s9 + $0x20] sm:$0xff] (!%p1067_p2), %v868_v46 }
 0x28f   : > { %v835_v2 = vadd.f32 %v1132_v1, %v642_v63  ;;  %v1133_v3 = vpop.f32.mrb[16].mxu1 }
 0x290   : > { %v1134_v5 = vpop.f32.mrb[17].mxu1  ;;  %v869_v47 = vld [vmem:[#allocation2 + $0x28] sm:$0xff] (!%p1067_p2) }
 0x291   : > { %851 = vst [vmem:[#allocation2 + $0x38] sm:$0xff] %v835_v2  ;;  %v1135_v6 = vadd.f32 %v1134_v5, %v1133_v3  ;;  %885 = vst [vmem:[%s1901_s9 + $0x28] sm:$0xff] (!%p1067_p2), %v869_v47 }
 0x293   : > { %v836_v7 = vadd.f32 %v1135_v6, %v643_v4  ;;  %v1136_v9 = vpop.f32.mrb[18].mxu1 }
 0x294   : > { %v1137_v11 = vpop.f32.mrb[19].mxu1  ;;  %v870_v48 = vld [vmem:[#allocation2 + $0x30] sm:$0xff] (!%p1067_p2) }
 0x295   : > { %852 = vst [vmem:[#allocation2 + $0x40] sm:$0xff] %v836_v7  ;;  %v1138_v12 = vadd.f32 %v1137_v11, %v1136_v9  ;;  %886 = vst [vmem:[%s1901_s9 + $0x30] sm:$0xff] (!%p1067_p2), %v870_v48 }
 0x297   : > { %v837_v13 = vadd.f32 %v1138_v12, %v644_v10  ;;  %v1139_v14 = vpop.f32.mrb[20].mxu1 }
 0x298   : > { %v1140_v16 = vpop.f32.mrb[21].mxu1  ;;  %v871_v49 = vld [vmem:[#allocation2 + $0x38] sm:$0xff] (!%p1067_p2) }
 0x299   : > { %853 = vst [vmem:[#allocation2 + $0x48] sm:$0xff] %v837_v13  ;;  %v1141_v17 = vadd.f32 %v1140_v16, %v1139_v14  ;;  %887 = vst [vmem:[%s1901_s9 + $0x38] sm:$0xff] (!%p1067_p2), %v871_v49 }
 0x29b   : > { %v838_v18 = vadd.f32 %v1141_v17, %v645_v15  ;;  %v1142_v19 = vpop.f32.mrb[22].mxu1 }
 0x29c   : > { %v1143_v21 = vpop.f32.mrb[23].mxu1  ;;  %v872_v50 = vld [vmem:[#allocation2 + $0x40] sm:$0xff] (!%p1067_p2) }
 0x29d   : > { %854 = vst [vmem:[#allocation2 + $0x50] sm:$0xff] %v838_v18  ;;  %v1144_v22 = vadd.f32 %v1143_v21, %v1142_v19  ;;  %888 = vst [vmem:[%s1901_s9 + $0x40] sm:$0xff] (!%p1067_p2), %v872_v50 }
 0x29f   : > { %v839_v23 = vadd.f32 %v1144_v22, %v646_v20  ;;  %v1145_v24 = vpop.f32.mrb[24].mxu1 }
 0x2a0   : > { %v1146_v26 = vpop.f32.mrb[25].mxu1  ;;  %v873_v51 = vld [vmem:[#allocation2 + $0x48] sm:$0xff] (!%p1067_p2) }
 0x2a1   : > { %855 = vst [vmem:[#allocation2 + $0x58] sm:$0xff] %v839_v23  ;;  %v1147_v27 = vadd.f32 %v1146_v26, %v1145_v24  ;;  %889 = vst [vmem:[%s1901_s9 + $0x48] sm:$0xff] (!%p1067_p2), %v873_v51 }
 0x2a3   : > { %v840_v28 = vadd.f32 %v1147_v27, %v647_v25  ;;  %v1148_v29 = vpop.f32.mrb[26].mxu1 }
 0x2a4   : > { %v1149_v31 = vpop.f32.mrb[27].mxu1  ;;  %v874_v52 = vld [vmem:[#allocation2 + $0x50] sm:$0xff] (!%p1067_p2) }
 0x2a5   : > { %856 = vst [vmem:[#allocation2 + $0x60] sm:$0xff] %v840_v28  ;;  %v1150_v32 = vadd.f32 %v1149_v31, %v1148_v29  ;;  %890 = vst [vmem:[%s1901_s9 + $0x50] sm:$0xff] (!%p1067_p2), %v874_v52 }
 0x2a7   : > { %v841_v33 = vadd.f32 %v1150_v32, %v648_v30  ;;  %v1151_v34 = vpop.f32.mrb[28].mxu1 }
 0x2a8   : > { %v1152_v36 = vpop.f32.mrb[29].mxu1  ;;  %v875_v53 = vld [vmem:[#allocation2 + $0x58] sm:$0xff] (!%p1067_p2) }
 0x2a9   : > { %857 = vst [vmem:[#allocation2 + $0x68] sm:$0xff] %v841_v33  ;;  %v1153_v55 = vadd.f32 %v1152_v36, %v1151_v34  ;;  %891 = vst [vmem:[%s1901_s9 + $0x58] sm:$0xff] (!%p1067_p2), %v875_v53 }
 0x2ab   : > { %v842_v37 = vadd.f32 %v1153_v55, %v649_v35  ;;  %v1154_v38 = vpop.f32.mrb[30].mxu1  ;;  %863 = sbr.rel (%p1067_p2) target bundleno = 698 (0x2ba), region = 60 }
 0x2ac   : > { %v1155_v39 = vpop.f32.mrb[31].mxu1  ;;  %v876_v8 = vld [vmem:[#allocation2 + $0x60] sm:$0xff] (!%p1067_p2) }
 0x2ad   : > { %858 = vst [vmem:[#allocation2 + $0x70] sm:$0xff] %v842_v37  ;;  %v1156_v40 = vadd.f32 %v1155_v39, %v1154_v38  ;;  %892 = vst [vmem:[%s1901_s9 + $0x60] sm:$0xff] (!%p1067_p2), %v876_v8 }
 0x2af   : > { %v843_v41 = vadd.f32 %v1156_v40, %v650_v56 }
 0x2b0   : > { %v877_v54 = vld [vmem:[#allocation2 + $0x68] sm:$0xff] (!%p1067_p2) }
 0x2b1   : > { %859 = vst [vmem:[#allocation2 + $0x78] sm:$0xff] %v843_v41  ;;  %893 = vst [vmem:[%s1901_s9 + $0x68] sm:$0xff] (!%p1067_p2), %v877_v54 }
 0x2b4   : > { %v878_v57 = vld [vmem:[#allocation2 + $0x70] sm:$0xff] }
 0x2b5   : > { %894 = vst [vmem:[%s1901_s9 + $0x70] sm:$0xff] %v878_v57 }
 0x2b8   : > { %v879_v58 = vld [vmem:[#allocation2 + $0x78] sm:$0xff] }
 0x2b9   : > { %895 = vst [vmem:[%s1901_s9 + $0x78] sm:$0xff] %v879_v58 }
 0x2ba PF: > { %s2180_s24 = sld [smem:[#allocation15_spill]]  ;;  %s910_s8 = sshll.u32 %s1901_s9, 4  ;;  %s2068_s8 = int_to_ptr.vmem [resolvable:$true] %s910_s8 }
 0x2bb   : > { %s2181_s7 = sld [smem:[#allocation23_spill]]  ;;  %s897_s23 = scalar_lea.sflag [#allocation5], %s1874_s20 }
 0x2bc   : > { %s1431_s4 = scalar_lea.vmem %s2068_s8, 2048  ;;  %p2182_p11 = scmp.ne.s32.totalorder %s2169_s14, 0 }
 0x2bd   : > { %p1432_p13 = scmp.ne.s32.totalorder %s2068_s8, %s1431_s4  ;;  %s1568_s15 = smov [#allocation9]  }
 0x2be   : > { %s1435_s30 = sshll.u32 %s1568_s15, 4  ;;  %s1436_s30 = int_to_ptr.vmem [resolvable:$false] %s1435_s30 }
 0x2bf   : > { %p1433_p6 = pnand %p1432_p13, %p2182_p11  ;;  %s1437_s13 = scalar_lea.vmem %s1436_s30, 4096 }
 0x2c0   : > { %s1076_s27 = sshll.u32 %s2180_s24, 11  ;;  %p1438_p1 = scmp.lt.s32.totalorder %s2068_s8, %s1436_s30 }
 0x2c1   : > { %s2065_s6 = scalar_lea.hbm %s2181_s7, %s1076_s27  ;;  %p1434_p5 = pneg %p1433_p6 }
 0x2c2   : > { %p1439_p0 = scmp.lt.s32.totalorder %s1437_s13, %s1431_s4 }
 0x2c4   : > { %p1440_p9 = por %p1439_p0, %p1438_p1 }
 0x2c6   : > { %p1441_p12 = pnand %p1440_p9, %p1434_p5 }
 0x2c8   : > { %1444 = shalt.err (!%p1441_p12)
}
 0x2c9   : > { %s1445_s12 = scalar_lea.hbm %s2065_s6, 2048  ;;  %s1449_s25 = scalar_lea.hbm %s2181_s7, 4096 }
 0x2ca   : > { %p1446_p3 = scmp.ne.s32.totalorder %s2065_s6, %s1445_s12  ;;  %p1450_p8 = scmp.lt.u32.totalorder %s2065_s6, %s2181_s7 }
 0x2cb   : > { %p1451_p10 = scmp.lt.u32.totalorder %s1449_s25, %s1445_s12  ;;  %p1453_p13 = scmp.lt.u32.totalorder %s1445_s12, %s2065_s6 }
 0x2cc   : > { %p1447_p4 = pnand %p1446_p3, %p2182_p11 }
 0x2cd   : > { %p1452_p2 = por %p1451_p10, %p1450_p8 }
 0x2ce   : > { %p1448_p7 = pneg %p1447_p4 }
 0x2cf   : > { %p1454_p6 = por %p1453_p13, %p1452_p2 }
 0x2d1   : > { %p1455_p5 = pnand %p1454_p6, %p1448_p7 }
 0x2d3   : > { %1458 = shalt.err (!%p1455_p5)
}
 0x2d4   : > { %s1569_s16 = smov 128   ;;  %s1570_s18 = smov 8  }
 0x2d5   : > { %1227 = dma.vmem_to_hbm [thread:$0]  (%p2182_p11), %s2068_s8, 2048, %s2065_s6, %s897_s23, %s1569_s16, %s1569_s16, %s1570_s18  }
 0x2d6 PF: > { %p1244_p1 = scmp.ge.s32.totalorder %s1557_s28, 2  ;;  %s925_s24 = sand.u32 1, %s1529_s21  }
 0x2d7   : > { %p2183_p0 = scmp.ne.s32.totalorder %s2171_s5, 0  ;;  %s926_s27 = scalar_lea.sflag [#allocation5], %s925_s24 }
 0x2d9   : > { %p1240_p9 = pnand %p1244_p1, %p2183_p0 }
 0x2db   : > { %1512 = dma.done.wait (!%p1240_p9), %s926_s27, 2048  }
 0x2dc   : > { %1514 = vsyncadd (!%p1240_p9), %s926_s27, 4294965248  ;;  %s24_s28 = sadd.s32 1, %s1557_s28   ;;  %s2184_s11 = sld [smem:[#allocation13_spill]] }
 0x2dd   : > { %p21_p12 = scmp.ge.s32.totalorder %s24_s28, 6   ;;  %s2185_s20 = sld [smem:[#allocation18_spill]] }
 0x2de   : > { %s2186_s14 = sld [smem:[#allocation14_spill]]  ;;  %s2187_s23 = sld [smem:[#allocation20_spill]] }
 0x2df   : > { %s2188_s25 = sld [smem:[#allocation16_spill]]  ;;  %s2189_s29 = sld [smem:[#allocation17_spill]] }
 0x2e0   : > { %s2190_s27 = sld [smem:[#allocation19_spill]]  ;;  %s2191_s18 = smov %s1521_s19 }
 0x2e1   : > { %s2193_s21 = smov %s1533_s22  ;;  %s2195_s24 = smov %s1549_s26 }
 0x2e2   : > { %s2192_s19 = smov %s2184_s11  ;;  %23 = sbr.rel (!%p21_p12) target bundleno = 15 (0xf), region = 120 }
 0x2e4   : > { %s2194_s22 = smov %s2186_s14 }
 0x2e5   : > { %s2196_s26 = smov %s2189_s29 }
 0x2e9   :  { %931 = vsyncpa [#allocation4], 1 }
 0x2ea   :  { %933 = vsyncpa [#allocation4 + $0x1], 1 }
 0x2eb   :  { %934 = vsyncpa [#allocation7], 1 }
 0x2ec   :  { %936 = vsyncpa [#allocation7 + $0x1], 1 }
 0x2ed   :  { %937 = vsyncpa [#allocation5], 1 }
 0x2ee   :  { %939 = vsyncpa [#allocation5 + $0x1], 1 }

</bundles_post_ra>
